<compile_context>
chip_gen: v7x
topology: tpu7x:2x2x1
jax: 0.10.0
libtpu: 0.0.40
codegen_flags: <defaults>
</compile_context>

<pallas_src>
import numpy as np
import jax
import jax.numpy as jnp
from jax.experimental import pallas as pl
from jax.experimental.pallas import tpu as pltpu


# ---------------------------------------------------------------------------
# Bilinear (align_corners=True) 1-D interpolation matrices (host-side constants)
# ---------------------------------------------------------------------------
def interp_matrix(n_in, n_out):
    """(n_out, n_in) row-stochastic matrix for 1-D linear interp, align_corners=True."""
    R = np.zeros((n_out, n_in), np.float32)
    if n_in == 1 or n_out == 1:
        R[:, 0] = 1.0
        return R
    scale = (n_in - 1) / (n_out - 1)
    for i in range(n_out):
        src = i * scale
        lo = min(int(np.floor(src)), n_in - 2)
        frac = src - lo
        R[i, lo] += 1.0 - frac
        R[i, lo + 1] += frac
    return R


# ---------------------------------------------------------------------------
# Kernel 1: fully fused grid-attention forward (one grid step per batch element)
# ---------------------------------------------------------------------------
def _fused_attention_kernel(
    xp_ref,       # (1, 4C, Ho*Wo)  2x2/s2 patches of x, feature-major
    xf_ref,       # (1, C,  H*W)    x, NCHW flattened (lane = H*W)
    g_ref,        # (1, G,  Hg*Wg)  gating signal, NCHW flattened
    theta_w_ref,  # (I, 4C)
    phi_w_ref,    # (I, G)
    phi_b_ref,    # (I, 1)
    psi_w_ref,    # (I, 1)
    psi_b_ref,    # (1, 1)
    rg_ref,       # (Hg*Wg, Ho*Wo)  bilinear interp: gating grid -> theta grid
    rx_ref,       # (Ho*Wo, H*W)    bilinear interp: theta grid  -> input grid
    w_w_ref,      # (C, C)          W 1x1 conv weight (out, in)
    w_b_ref,      # (C, 1)
    conv_ref,     # out (1, C, H*W) W(y) before batch-norm
    attn_ref,     # out (1, 1, H*W) sigm_psi_f at full resolution
    sum_ref,      # out (1, C, 1)   per-batch channel sums of conv (BN partial)
    sq_ref,       # out (1, C, 1)   per-batch channel sum-of-squares (BN partial)
):
    f32 = jnp.float32

    # theta: 2x2 stride-2 conv (no bias) as a single MXU matmul -> (I, Ho*Wo)
    theta_t = jnp.dot(theta_w_ref[...], xp_ref[0], preferred_element_type=f32)

    # phi: 1x1 conv on g, then bilinear upsample to the theta grid -> (I, Ho*Wo)
    phi_t = jnp.dot(phi_w_ref[...], g_ref[0], preferred_element_type=f32) + phi_b_ref[...]
    phi_up_t = jnp.dot(phi_t, rg_ref[...], preferred_element_type=f32)

    # f = relu(theta + phi_up)                                    (I, Ho*Wo)
    f = jnp.maximum(theta_t + phi_up_t, 0.0)

    # psi: 1x1 conv to a single channel as VPU multiply + sublane reduce (no MXU)
    z = jnp.sum(f * psi_w_ref[...], axis=0, keepdims=True) + psi_b_ref[...]
    attn_c = jax.nn.sigmoid(z)                                    # (1, Ho*Wo)

    # bilinear upsample of the attention map to full resolution (lane-dense)
    attn_up = jnp.dot(attn_c, rx_ref[...], preferred_element_type=f32)  # (1, H*W)
    attn_ref[0] = attn_up

    # gating + W 1x1 conv, feature-major (lane = H*W)
    y_t = attn_up * xf_ref[0]                                     # (C, H*W)
    conv = jnp.dot(w_w_ref[...], y_t, preferred_element_type=f32) + w_b_ref[...]
    conv_ref[0] = conv

    # per-batch BatchNorm partial statistics (reduced across batch in JAX)
    sum_ref[0] = jnp.sum(conv, axis=1, keepdims=True)
    sq_ref[0] = jnp.sum(conv * conv, axis=1, keepdims=True)


def fused_attention(xp, xf, gf, theta_wT, phi_wT, phi_b, psi_w, psi_b, RgT, RxT, W_w, W_b):
    B, C4, P = xp.shape
    _, C, S = xf.shape
    _, G, Q = gf.shape

    def full(arr):  # whole-array (weight / interp-matrix) block, resident each step
        return pl.BlockSpec(arr.shape, lambda b: (0, 0))

    return pl.pallas_call(
        _fused_attention_kernel,
        grid=(B,),
        in_specs=[
            pl.BlockSpec((1, C4, P), lambda b: (b, 0, 0)),
            pl.BlockSpec((1, C, S), lambda b: (b, 0, 0)),
            pl.BlockSpec((1, G, Q), lambda b: (b, 0, 0)),
            full(theta_wT), full(phi_wT), full(phi_b), full(psi_w),
            full(psi_b), full(RgT), full(RxT), full(W_w), full(W_b),
        ],
        out_specs=(
            pl.BlockSpec((1, C, S), lambda b: (b, 0, 0)),
            pl.BlockSpec((1, 1, S), lambda b: (b, 0, 0)),
            pl.BlockSpec((1, C, 1), lambda b: (b, 0, 0)),
            pl.BlockSpec((1, C, 1), lambda b: (b, 0, 0)),
        ),
        out_shape=(
            jax.ShapeDtypeStruct((B, C, S), jnp.float32),
            jax.ShapeDtypeStruct((B, 1, S), jnp.float32),
            jax.ShapeDtypeStruct((B, C, 1), jnp.float32),
            jax.ShapeDtypeStruct((B, C, 1), jnp.float32),
        ),
        compiler_params=pltpu.CompilerParams(dimension_semantics=("parallel",)),
    )(xp, xf, gf, theta_wT, phi_wT, phi_b, psi_w, psi_b, RgT, RxT, W_w, W_b)


# ---------------------------------------------------------------------------
# Kernel 2: BatchNorm apply, written in place over the conv output (aliased)
# ---------------------------------------------------------------------------
def _bn_apply_kernel(x_ref, scale_ref, shift_ref, o_ref):
    o_ref[0] = x_ref[0] * scale_ref[...] + shift_ref[...]


def bn_apply(conv, scale, shift):
    B, C, S = conv.shape
    return pl.pallas_call(
        _bn_apply_kernel,
        grid=(B,),
        in_specs=[pl.BlockSpec((1, C, S), lambda b: (b, 0, 0)),
                  pl.BlockSpec((C, 1), lambda b: (0, 0)),
                  pl.BlockSpec((C, 1), lambda b: (0, 0))],
        out_specs=pl.BlockSpec((1, C, S), lambda b: (b, 0, 0)),
        out_shape=jax.ShapeDtypeStruct((B, C, S), jnp.float32),
        input_output_aliases={0: 0},   # normalize in place, no extra HBM buffer
        compiler_params=pltpu.CompilerParams(dimension_semantics=("parallel",)),
    )(conv, scale, shift)


# ---------------------------------------------------------------------------
# Forward wrapper (NCHW in / NCHW out, like the PyTorch module)
# ---------------------------------------------------------------------------
def grid_attention_forward(x_nchw, g_nchw, params, sub_sample=(2, 2), eps=1e-5):
    B, C, H, W = x_nchw.shape
    _, G, Hg, Wg = g_nchw.shape
    sh, sw = sub_sample
    Ho, Wo = H // sh, W // sw

    x = x_nchw.astype(jnp.float32)
    g = g_nchw.astype(jnp.float32)

    # NCHW-native flattening (feature-major; lane dim = flattened spatial)
    xf = x.reshape(B, C, H * W)
    gf = g.reshape(B, G, Hg * Wg)
    # 2x2 stride-2 patches for theta:  (B, (dh*sw+dw)*C + c, ph*Wo+pw)
    xp = (x.reshape(B, C, Ho, sh, Wo, sw)
           .transpose(0, 3, 5, 1, 2, 4)
           .reshape(B, sh * sw * C, Ho * Wo))

    # Precomputed bilinear (align_corners=True) interpolation matrices.
    # TODO(synk): at very large spatial sizes these dense kron matrices should be
    # factorized / the spatial axis tiled; fine at typical attention-gate sizes.
    RgT = jnp.asarray(np.kron(interp_matrix(Hg, Ho), interp_matrix(Wg, Wo)).T)  # (Hg*Wg, Ho*Wo)
    RxT = jnp.asarray(np.kron(interp_matrix(Ho, H), interp_matrix(Wo, W)).T)    # (Ho*Wo, H*W)

    conv, attn, ch_sum, ch_sq = fused_attention(
        xp, xf, gf,
        params["theta_wT"], params["phi_wT"], params["phi_b"],
        params["psi_w"], params["psi_b"], RgT, RxT,
        params["W_w"], params["W_b"])

    # BatchNorm (training mode: biased batch statistics); partials reduced in JAX.
    n = float(B * H * W)
    mean = jnp.sum(ch_sum, axis=0) / n                                   # (C, 1)
    var = jnp.maximum(jnp.sum(ch_sq, axis=0) / n - mean * mean, 0.0)     # clamp >= 0
    inv_std = jax.lax.rsqrt(var + eps)
    scale = params["bn_g"] * inv_std                                     # (C, 1)
    shift = params["bn_b"] - mean * scale                                # (C, 1)

    wy = bn_apply(conv, scale, shift)                                    # (B, C, H*W)

    W_y = wy.reshape(B, C, H, W)
    sigm_psi_f = attn.reshape(B, 1, H, W)
    return W_y, sigm_psi_f


# ---------------------------------------------------------------------------
# Parameter initialization (PyTorch layouts converted to kernel layouts)
# ---------------------------------------------------------------------------
def init_params(key, in_channels, gating_channels, inter_channels, sub_sample=(2, 2)):
    C, G, I = in_channels, gating_channels, inter_channels
    sh, sw = sub_sample
    ks = jax.random.split(key, 5)

    def kaiming(k, shape, fan_in):
        return jax.random.normal(k, shape, jnp.float32) * jnp.sqrt(2.0 / fan_in)

    # theta: Conv2d(C -> I, k=sub_sample, s=sub_sample, no bias); torch (I, C, sh, sw)
    theta_pt = kaiming(ks[0], (I, C, sh, sw), C * sh * sw)
    theta_wT = theta_pt.transpose(0, 2, 3, 1).reshape(I, sh * sw * C)   # matches xp packing

    # phi: Conv2d(G -> I, 1x1, bias)
    phi_wT = kaiming(ks[1], (I, G, 1, 1), G)[:, :, 0, 0]                # (I, G)
    phi_b = jnp.zeros((I, 1), jnp.float32)

    # psi: Conv2d(I -> 1, 1x1, bias)
    psi_w = kaiming(ks[2], (1, I, 1, 1), I)[0, :, 0, 0].reshape(I, 1)   # (I, 1)
    psi_b = jnp.zeros((1, 1), jnp.float32)

    # W: Conv2d(C -> C, 1x1, bias) followed by BatchNorm2d(C)
    W_w = kaiming(ks[3], (C, C, 1, 1), C)[:, :, 0, 0]                   # (C_out, C_in)
    W_b = jnp.zeros((C, 1), jnp.float32)
    bn_g = 1.0 + 0.02 * jax.random.normal(ks[4], (C, 1), jnp.float32)
    bn_b = jnp.zeros((C, 1), jnp.float32)

    return dict(theta_wT=theta_wT, phi_wT=phi_wT, phi_b=phi_b, psi_w=psi_w,
                psi_b=psi_b, W_w=W_w, W_b=W_b, bn_g=bn_g, bn_b=bn_b)


# ---------------------------------------------------------------------------
# Pure-JAX reference (same math, straightforward einsum formulation)
# ---------------------------------------------------------------------------
def reference_forward(x, g, params, sub_sample=(2, 2), eps=1e-5):
    B, C, H, W = x.shape
    _, G, Hg, Wg = g.shape
    sh, sw = sub_sample
    Ho, Wo = H // sh, W // sw
    x = x.astype(jnp.float32)
    g = g.astype(jnp.float32)

    xp = (x.reshape(B, C, Ho, sh, Wo, sw).transpose(0, 3, 5, 1, 2, 4)
           .reshape(B, sh * sw * C, Ho * Wo))
    theta = jnp.einsum("ik,bkp->bip", params["theta_wT"], xp)
    phi = jnp.einsum("ig,bgq->biq", params["phi_wT"], g.reshape(B, G, Hg * Wg)) + params["phi_b"][None]
    RgT = jnp.asarray(np.kron(interp_matrix(Hg, Ho), interp_matrix(Wg, Wo)).T)
    phi_up = jnp.einsum("biq,qp->bip", phi, RgT)
    f = jnp.maximum(theta + phi_up, 0.0)
    z = jnp.einsum("bip,il->blp", f, params["psi_w"]) + params["psi_b"][None]
    attn_c = jax.nn.sigmoid(z)
    RxT = jnp.asarray(np.kron(interp_matrix(Ho, H), interp_matrix(Wo, W)).T)
    attn_up = jnp.einsum("blp,ps->bls", attn_c, RxT)
    y = attn_up * x.reshape(B, C, H * W)
    conv = jnp.einsum("oc,bcs->bos", params["W_w"], y) + params["W_b"][None]
    mean = conv.mean(axis=(0, 2), keepdims=True)
    var = jnp.maximum((conv * conv).mean(axis=(0, 2), keepdims=True) - mean * mean, 0.0)
    wy = (conv - mean) * jax.lax.rsqrt(var + eps) * params["bn_g"][None] + params["bn_b"][None]
    return wy.reshape(B, C, H, W), attn_up.reshape(B, 1, H, W)


# ---------------------------------------------------------------------------
# Main
# ---------------------------------------------------------------------------
if __name__ == "__main__":
    key = jax.random.PRNGKey(0)
    kx, kg, kp = jax.random.split(key, 3)

    B, C, H, W = 2, 8, 16, 16           # x: (b, in_channels, h, w)
    G, Hg, Wg = 16, 4, 4                # g: gating feature map (b, gating_channels, hg, wg)
    inter = C // 2                      # inter_channels = in_channels // 2

    x = jax.random.normal(kx, (B, C, H, W), jnp.float32)
    g = jax.random.normal(kg, (B, G, Hg, Wg), jnp.float32)
    params = init_params(kp, C, G, inter)

    fwd = jax.jit(grid_attention_forward)
    W_y, sigm_psi_f = fwd(x, g, params)
    jax.block_until_ready((W_y, sigm_psi_f))

    assert W_y.shape == (B, C, H, W) and W_y.dtype == jnp.float32
    assert sigm_psi_f.shape == (B, 1, H, W)
    assert bool(jnp.all(jnp.isfinite(W_y)))
    assert bool(jnp.all((sigm_psi_f >= 0.0) & (sigm_psi_f <= 1.0)))

    # correctness check against the pure-JAX reference (loose f32/MXU tolerance)
    W_y_ref, attn_ref_out = reference_forward(x, g, params)
    err_wy = float(jnp.max(jnp.abs(W_y - W_y_ref)))
    err_attn = float(jnp.max(jnp.abs(sigm_psi_f - attn_ref_out)))
    assert err_wy < 2e-2 and err_attn < 2e-2, (err_wy, err_attn)

    print("KERNEL_OK")
</pallas_src>

<mosaic_0001>
module attributes {stable_mosaic.version = 11 : i64} {
  func.func @_bn_apply_kernel(%arg0: i32, %arg1: memref<1x8x256xf32, #tpu.memory_space<vmem>>, %arg2: memref<8x1xf32, #tpu.memory_space<vmem>>, %arg3: memref<8x1xf32, #tpu.memory_space<vmem>>, %arg4: memref<1x8x256xf32, #tpu.memory_space<vmem>>) attributes {dimension_semantics = [#tpu.dimension_semantics<parallel>], iteration_bounds = array<i64: 2>, scalar_prefetch = 0 : i64, scratch_operands = 0 : i64, tpu.core_type = #tpu.core_type<tc>, window_params = [{transform_indices = @transform_0, window_bounds = array<i64: 1, 8, 256>}, {pipeline_mode = #tpu.pipeline_mode<synchronous>, transform_indices = @transform_1, window_bounds = array<i64: 8, 1>}, {pipeline_mode = #tpu.pipeline_mode<synchronous>, transform_indices = @transform_2, window_bounds = array<i64: 8, 1>}, {transform_indices = @transform_3, window_bounds = array<i64: 1, 8, 256>}]} {
    %c0 = arith.constant 0 : index
    %c0_0 = arith.constant 0 : index
    %c0_1 = arith.constant 0 : index
    %0 = vector.load %arg1[%c0, %c0_0, %c0_1] : memref<1x8x256xf32, #tpu.memory_space<vmem>>, vector<1x8x256xf32>
    %1 = vector.shape_cast %0 : vector<1x8x256xf32> to vector<8x256xf32>
    %c0_2 = arith.constant 0 : index
    %c0_3 = arith.constant 0 : index
    %2 = vector.load %arg2[%c0_2, %c0_3] : memref<8x1xf32, #tpu.memory_space<vmem>>, vector<8x1xf32>
    %3 = vector.broadcast %2 : vector<8x1xf32> to vector<8x256xf32>
    %4 = arith.mulf %1, %3 : vector<8x256xf32>
    %c0_4 = arith.constant 0 : index
    %c0_5 = arith.constant 0 : index
    %5 = vector.load %arg3[%c0_4, %c0_5] : memref<8x1xf32, #tpu.memory_space<vmem>>, vector<8x1xf32>
    %6 = vector.broadcast %5 : vector<8x1xf32> to vector<8x256xf32>
    %7 = arith.addf %4, %6 : vector<8x256xf32>
    %c0_6 = arith.constant 0 : index
    %c0_7 = arith.constant 0 : index
    %c0_8 = arith.constant 0 : index
    %8 = vector.load %arg4[%c0_6, %c0_7, %c0_8] : memref<1x8x256xf32, #tpu.memory_space<vmem>>, vector<1x8x256xf32>
    %9 = vector.shape_cast %8 : vector<1x8x256xf32> to vector<8x256xf32>
    %10 = vector.shape_cast %7 : vector<8x256xf32> to vector<1x8x256xf32>
    tpu.vector_store %arg4[%c0_6, %c0_7, %c0_8], %10 {strides = array<i32>} : memref<1x8x256xf32, #tpu.memory_space<vmem>>, vector<1x8x256xf32>,
    return
  }
  func.func @transform_0(%arg0: i32) -> (i32, i32, i32) {
    %c0_i32 = arith.constant 0 : i32
    %c0_i32_0 = arith.constant 0 : i32
    %c0_i32_1 = arith.constant 0 : i32
    return %arg0, %c0_i32, %c0_i32_0 : i32, i32, i32
  }
  func.func @transform_1(%arg0: i32) -> (i32, i32) {
    %c0_i32 = arith.constant 0 : i32
    %c0_i32_0 = arith.constant 0 : i32
    %c0_i32_1 = arith.constant 0 : i32
    return %c0_i32, %c0_i32_0 : i32, i32
  }
  func.func @transform_2(%arg0: i32) -> (i32, i32) {
    %c0_i32 = arith.constant 0 : i32
    %c0_i32_0 = arith.constant 0 : i32
    %c0_i32_1 = arith.constant 0 : i32
    return %c0_i32, %c0_i32_0 : i32, i32
  }
  func.func @transform_3(%arg0: i32) -> (i32, i32, i32) {
    %c0_i32 = arith.constant 0 : i32
    %c0_i32_0 = arith.constant 0 : i32
    %c0_i32_1 = arith.constant 0 : i32
    return %arg0, %c0_i32, %c0_i32_0 : i32, i32, i32
  }
}

module attributes {stable_mosaic.version = 11 : i64} {
  func.func @_fused_attention_kernel(%arg0: i32, %arg1: memref<1x32x64xf32, #tpu.memory_space<vmem>>, %arg2: memref<1x8x256xf32, #tpu.memory_space<vmem>>, %arg3: memref<1x16x16xf32, #tpu.memory_space<vmem>>, %arg4: memref<4x32xf32, #tpu.memory_space<vmem>>, %arg5: memref<4x16xf32, #tpu.memory_space<vmem>>, %arg6: memref<4x1xf32, #tpu.memory_space<vmem>>, %arg7: memref<4x1xf32, #tpu.memory_space<vmem>>, %arg8: memref<1x1xf32, #tpu.memory_space<vmem>>, %arg9: memref<16x64xf32, #tpu.memory_space<vmem>>, %arg10: memref<64x256xf32, #tpu.memory_space<vmem>>, %arg11: memref<8x8xf32, #tpu.memory_space<vmem>>, %arg12: memref<8x1xf32, #tpu.memory_space<vmem>>, %arg13: memref<1x8x256xf32, #tpu.memory_space<vmem>>, %arg14: memref<1x1x256xf32, #tpu.memory_space<vmem>>, %arg15: memref<1x8x1xf32, #tpu.memory_space<vmem>>, %arg16: memref<1x8x1xf32, #tpu.memory_space<vmem>>) attributes {dimension_semantics = [#tpu.dimension_semantics<parallel>], iteration_bounds = array<i64: 2>, scalar_prefetch = 0 : i64, scratch_operands = 0 : i64, tpu.core_type = #tpu.core_type<tc>, window_params = [{transform_indices = @transform_0, window_bounds = array<i64: 1, 32, 64>}, {transform_indices = @transform_1, window_bounds = array<i64: 1, 8, 256>}, {transform_indices = @transform_2, window_bounds = array<i64: 1, 16, 16>}, {pipeline_mode = #tpu.pipeline_mode<synchronous>, transform_indices = @transform_3, window_bounds = array<i64: 4, 32>}, {pipeline_mode = #tpu.pipeline_mode<synchronous>, transform_indices = @transform_4, window_bounds = array<i64: 4, 16>}, {pipeline_mode = #tpu.pipeline_mode<synchronous>, transform_indices = @transform_5, window_bounds = array<i64: 4, 1>}, {pipeline_mode = #tpu.pipeline_mode<synchronous>, transform_indices = @transform_6, window_bounds = array<i64: 4, 1>}, {pipeline_mode = #tpu.pipeline_mode<synchronous>, transform_indices = @transform_7, window_bounds = array<i64: 1, 1>}, {pipeline_mode = #tpu.pipeline_mode<synchronous>, transform_indices = @transform_8, window_bounds = array<i64: 16, 64>}, {pipeline_mode = #tpu.pipeline_mode<synchronous>, transform_indices = @transform_9, window_bounds = array<i64: 64, 256>}, {pipeline_mode = #tpu.pipeline_mode<synchronous>, transform_indices = @transform_10, window_bounds = array<i64: 8, 8>}, {pipeline_mode = #tpu.pipeline_mode<synchronous>, transform_indices = @transform_11, window_bounds = array<i64: 8, 1>}, {transform_indices = @transform_12, window_bounds = array<i64: 1, 8, 256>}, {transform_indices = @transform_13, window_bounds = array<i64: 1, 1, 256>}, {transform_indices = @transform_14, window_bounds = array<i64: 1, 8, 1>}, {transform_indices = @transform_15, window_bounds = array<i64: 1, 8, 1>}]} {
    %c0 = arith.constant 0 : index
    %c0_0 = arith.constant 0 : index
    %0 = vector.load %arg4[%c0, %c0_0] : memref<4x32xf32, #tpu.memory_space<vmem>>, vector<4x32xf32>
    %c0_1 = arith.constant 0 : index
    %c0_2 = arith.constant 0 : index
    %c0_3 = arith.constant 0 : index
    %1 = vector.load %arg1[%c0_1, %c0_2, %c0_3] : memref<1x32x64xf32, #tpu.memory_space<vmem>>, vector<1x32x64xf32>
    %2 = vector.shape_cast %1 : vector<1x32x64xf32> to vector<32x64xf32>
    %cst = arith.constant dense<0.000000e+00> : vector<4x64xf32>
    %3 = tpu.matmul %0, %2, %cst {dimension_numbers = #tpu.dot_dimension_numbers<[1], [0], [0], [1], [0, 0, 1, 1], [], []>} : vector<4x32xf32>, vector<32x64xf32>, vector<4x64xf32> -> vector<4x64xf32>
    %c0_4 = arith.constant 0 : index
    %c0_5 = arith.constant 0 : index
    %4 = vector.load %arg5[%c0_4, %c0_5] : memref<4x16xf32, #tpu.memory_space<vmem>>, vector<4x16xf32>
    %c0_6 = arith.constant 0 : index
    %c0_7 = arith.constant 0 : index
    %c0_8 = arith.constant 0 : index
    %5 = vector.load %arg3[%c0_6, %c0_7, %c0_8] : memref<1x16x16xf32, #tpu.memory_space<vmem>>, vector<1x16x16xf32>
    %6 = vector.shape_cast %5 : vector<1x16x16xf32> to vector<16x16xf32>
    %cst_9 = arith.constant dense<0.000000e+00> : vector<4x16xf32>
    %7 = tpu.matmul %4, %6, %cst_9 {dimension_numbers = #tpu.dot_dimension_numbers<[1], [0], [0], [1], [0, 0, 1, 1], [], []>} : vector<4x16xf32>, vector<16x16xf32>, vector<4x16xf32> -> vector<4x16xf32>
    %c0_10 = arith.constant 0 : index
    %c0_11 = arith.constant 0 : index
    %8 = vector.load %arg6[%c0_10, %c0_11] : memref<4x1xf32, #tpu.memory_space<vmem>>, vector<4x1xf32>
    %9 = vector.broadcast %8 : vector<4x1xf32> to vector<4x16xf32>
    %10 = arith.addf %7, %9 : vector<4x16xf32>
    %c0_12 = arith.constant 0 : index
    %c0_13 = arith.constant 0 : index
    %11 = vector.load %arg9[%c0_12, %c0_13] : memref<16x64xf32, #tpu.memory_space<vmem>>, vector<16x64xf32>
    %cst_14 = arith.constant dense<0.000000e+00> : vector<4x64xf32>
    %12 = tpu.matmul %10, %11, %cst_14 {dimension_numbers = #tpu.dot_dimension_numbers<[1], [0], [0], [1], [0, 0, 1, 1], [], []>} : vector<4x16xf32>, vector<16x64xf32>, vector<4x64xf32> -> vector<4x64xf32>
    %13 = arith.addf %3, %12 : vector<4x64xf32>
    %cst_15 = arith.constant 0.000000e+00 : f32
    %14 = vector.broadcast %cst_15 : f32 to vector<4x64xf32>
    %15 = arith.maximumf %13, %14 : vector<4x64xf32>
    %c0_16 = arith.constant 0 : index
    %c0_17 = arith.constant 0 : index
    %16 = vector.load %arg7[%c0_16, %c0_17] : memref<4x1xf32, #tpu.memory_space<vmem>>, vector<4x1xf32>
    %17 = vector.broadcast %16 : vector<4x1xf32> to vector<4x64xf32>
    %18 = arith.mulf %15, %17 : vector<4x64xf32>
    %cst_18 = arith.constant dense<0.000000e+00> : vector<64xf32>
    %19 = vector.multi_reduction <add>, %18, %cst_18 [0] : vector<4x64xf32> to vector<64xf32>
    %20 = vector.shape_cast %19 : vector<64xf32> to vector<1x64xf32>
    %c0_19 = arith.constant 0 : index
    %c0_20 = arith.constant 0 : index
    %21 = vector.load %arg8[%c0_19, %c0_20] : memref<1x1xf32, #tpu.memory_space<vmem>>, vector<1x1xf32>
    %22 = vector.broadcast %21 : vector<1x1xf32> to vector<1x64xf32>
    %23 = arith.addf %20, %22 : vector<1x64xf32>
    %24 = arith.negf %23 : vector<1x64xf32>
    %25 = math.exp %24 : vector<1x64xf32>
    %cst_21 = arith.constant 1.000000e+00 : f32
    %26 = vector.broadcast %cst_21 : f32 to vector<1x64xf32>
    %27 = arith.addf %26, %25 : vector<1x64xf32>
    %28 = arith.divf %26, %27 : vector<1x64xf32>
    %c0_22 = arith.constant 0 : index
    %c0_23 = arith.constant 0 : index
    %29 = vector.load %arg10[%c0_22, %c0_23] : memref<64x256xf32, #tpu.memory_space<vmem>>, vector<64x256xf32>
    %cst_24 = arith.constant dense<0.000000e+00> : vector<1x256xf32>
    %30 = tpu.matmul %28, %29, %cst_24 {dimension_numbers = #tpu.dot_dimension_numbers<[1], [0], [0], [1], [0, 0, 1, 1], [], []>} : vector<1x64xf32>, vector<64x256xf32>, vector<1x256xf32> -> vector<1x256xf32>
    %c0_25 = arith.constant 0 : index
    %c0_26 = arith.constant 0 : index
    %c0_27 = arith.constant 0 : index
    %31 = vector.load %arg14[%c0_25, %c0_26, %c0_27] : memref<1x1x256xf32, #tpu.memory_space<vmem>>, vector<1x1x256xf32>
    %32 = vector.shape_cast %31 : vector<1x1x256xf32> to vector<1x256xf32>
    %33 = vector.shape_cast %30 : vector<1x256xf32> to vector<1x1x256xf32>
    tpu.vector_store %arg14[%c0_25, %c0_26, %c0_27], %33 {strides = array<i32>} : memref<1x1x256xf32, #tpu.memory_space<vmem>>, vector<1x1x256xf32>,
    %c0_28 = arith.constant 0 : index
    %c0_29 = arith.constant 0 : index
    %c0_30 = arith.constant 0 : index
    %34 = vector.load %arg2[%c0_28, %c0_29, %c0_30] : memref<1x8x256xf32, #tpu.memory_space<vmem>>, vector<1x8x256xf32>
    %35 = vector.shape_cast %34 : vector<1x8x256xf32> to vector<8x256xf32>
    %36 = vector.broadcast %30 : vector<1x256xf32> to vector<8x256xf32>
    %37 = arith.mulf %36, %35 : vector<8x256xf32>
    %c0_31 = arith.constant 0 : index
    %c0_32 = arith.constant 0 : index
    %38 = vector.load %arg11[%c0_31, %c0_32] : memref<8x8xf32, #tpu.memory_space<vmem>>, vector<8x8xf32>
    %cst_33 = arith.constant dense<0.000000e+00> : vector<8x256xf32>
    %39 = tpu.matmul %38, %37, %cst_33 {dimension_numbers = #tpu.dot_dimension_numbers<[1], [0], [0], [1], [0, 0, 1, 1], [], []>} : vector<8x8xf32>, vector<8x256xf32>, vector<8x256xf32> -> vector<8x256xf32>
    %c0_34 = arith.constant 0 : index
    %c0_35 = arith.constant 0 : index
    %40 = vector.load %arg12[%c0_34, %c0_35] : memref<8x1xf32, #tpu.memory_space<vmem>>, vector<8x1xf32>
    %41 = vector.broadcast %40 : vector<8x1xf32> to vector<8x256xf32>
    %42 = arith.addf %39, %41 : vector<8x256xf32>
    %c0_36 = arith.constant 0 : index
    %c0_37 = arith.constant 0 : index
    %c0_38 = arith.constant 0 : index
    %43 = vector.load %arg13[%c0_36, %c0_37, %c0_38] : memref<1x8x256xf32, #tpu.memory_space<vmem>>, vector<1x8x256xf32>
    %44 = vector.shape_cast %43 : vector<1x8x256xf32> to vector<8x256xf32>
    %45 = vector.shape_cast %42 : vector<8x256xf32> to vector<1x8x256xf32>
    tpu.vector_store %arg13[%c0_36, %c0_37, %c0_38], %45 {strides = array<i32>} : memref<1x8x256xf32, #tpu.memory_space<vmem>>, vector<1x8x256xf32>,
    %cst_39 = arith.constant dense<0.000000e+00> : vector<8xf32>
    %46 = vector.multi_reduction <add>, %42, %cst_39 [1] : vector<8x256xf32> to vector<8xf32>
    %47 = vector.shape_cast %46 : vector<8xf32> to vector<8x1xf32>
    %c0_40 = arith.constant 0 : index
    %c0_41 = arith.constant 0 : index
    %c0_42 = arith.constant 0 : index
    %48 = vector.load %arg15[%c0_40, %c0_41, %c0_42] : memref<1x8x1xf32, #tpu.memory_space<vmem>>, vector<1x8x1xf32>
    %49 = vector.shape_cast %48 : vector<1x8x1xf32> to vector<8x1xf32>
    %50 = vector.shape_cast %47 : vector<8x1xf32> to vector<1x8x1xf32>
    tpu.vector_store %arg15[%c0_40, %c0_41, %c0_42], %50 {strides = array<i32>} : memref<1x8x1xf32, #tpu.memory_space<vmem>>, vector<1x8x1xf32>,
    %51 = arith.mulf %42, %42 : vector<8x256xf32>
    %cst_43 = arith.constant dense<0.000000e+00> : vector<8xf32>
    %52 = vector.multi_reduction <add>, %51, %cst_43 [1] : vector<8x256xf32> to vector<8xf32>
    %53 = vector.shape_cast %52 : vector<8xf32> to vector<8x1xf32>
    %c0_44 = arith.constant 0 : index
    %c0_45 = arith.constant 0 : index
    %c0_46 = arith.constant 0 : index
    %54 = vector.load %arg16[%c0_44, %c0_45, %c0_46] : memref<1x8x1xf32, #tpu.memory_space<vmem>>, vector<1x8x1xf32>
    %55 = vector.shape_cast %54 : vector<1x8x1xf32> to vector<8x1xf32>
    %56 = vector.shape_cast %53 : vector<8x1xf32> to vector<1x8x1xf32>
    tpu.vector_store %arg16[%c0_44, %c0_45, %c0_46], %56 {strides = array<i32>} : memref<1x8x1xf32, #tpu.memory_space<vmem>>, vector<1x8x1xf32>,
    return
  }
  func.func @transform_0(%arg0: i32) -> (i32, i32, i32) {
    %c0_i32 = arith.constant 0 : i32
    %c0_i32_0 = arith.constant 0 : i32
    %c0_i32_1 = arith.constant 0 : i32
    return %arg0, %c0_i32, %c0_i32_0 : i32, i32, i32
  }
  func.func @transform_1(%arg0: i32) -> (i32, i32, i32) {
    %c0_i32 = arith.constant 0 : i32
    %c0_i32_0 = arith.constant 0 : i32
    %c0_i32_1 = arith.constant 0 : i32
    return %arg0, %c0_i32, %c0_i32_0 : i32, i32, i32
  }
  func.func @transform_2(%arg0: i32) -> (i32, i32, i32) {
    %c0_i32 = arith.constant 0 : i32
    %c0_i32_0 = arith.constant 0 : i32
    %c0_i32_1 = arith.constant 0 : i32
    return %arg0, %c0_i32, %c0_i32_0 : i32, i32, i32
  }
  func.func @transform_3(%arg0: i32) -> (i32, i32) {
    %c0_i32 = arith.constant 0 : i32
    %c0_i32_0 = arith.constant 0 : i32
    %c0_i32_1 = arith.constant 0 : i32
    return %c0_i32, %c0_i32_0 : i32, i32
  }
  func.func @transform_4(%arg0: i32) -> (i32, i32) {
    %c0_i32 = arith.constant 0 : i32
    %c0_i32_0 = arith.constant 0 : i32
    %c0_i32_1 = arith.constant 0 : i32
    return %c0_i32, %c0_i32_0 : i32, i32
  }
  func.func @transform_5(%arg0: i32) -> (i32, i32) {
    %c0_i32 = arith.constant 0 : i32
    %c0_i32_0 = arith.constant 0 : i32
    %c0_i32_1 = arith.constant 0 : i32
    return %c0_i32, %c0_i32_0 : i32, i32
  }
  func.func @transform_6(%arg0: i32) -> (i32, i32) {
    %c0_i32 = arith.constant 0 : i32
    %c0_i32_0 = arith.constant 0 : i32
    %c0_i32_1 = arith.constant 0 : i32
    return %c0_i32, %c0_i32_0 : i32, i32
  }
  func.func @transform_7(%arg0: i32) -> (i32, i32) {
    %c0_i32 = arith.constant 0 : i32
    %c0_i32_0 = arith.constant 0 : i32
    %c0_i32_1 = arith.constant 0 : i32
    return %c0_i32, %c0_i32_0 : i32, i32
  }
  func.func @transform_8(%arg0: i32) -> (i32, i32) {
    %c0_i32 = arith.constant 0 : i32
    %c0_i32_0 = arith.constant 0 : i32
    %c0_i32_1 = arith.constant 0 : i32
    return %c0_i32, %c0_i32_0 : i32, i32
  }
  func.func @transform_9(%arg0: i32) -> (i32, i32) {
    %c0_i32 = arith.constant 0 : i32
    %c0_i32_0 = arith.constant 0 : i32
    %c0_i32_1 = arith.constant 0 : i32
    return %c0_i32, %c0_i32_0 : i32, i32
  }
  func.func @transform_10(%arg0: i32) -> (i32, i32) {
    %c0_i32 = arith.constant 0 : i32
    %c0_i32_0 = arith.constant 0 : i32
    %c0_i32_1 = arith.constant 0 : i32
    return %c0_i32, %c0_i32_0 : i32, i32
  }
  func.func @transform_11(%arg0: i32) -> (i32, i32) {
    %c0_i32 = arith.constant 0 : i32
    %c0_i32_0 = arith.constant 0 : i32
    %c0_i32_1 = arith.constant 0 : i32
    return %c0_i32, %c0_i32_0 : i32, i32
  }
  func.func @transform_12(%arg0: i32) -> (i32, i32, i32) {
    %c0_i32 = arith.constant 0 : i32
    %c0_i32_0 = arith.constant 0 : i32
    %c0_i32_1 = arith.constant 0 : i32
    return %arg0, %c0_i32, %c0_i32_0 : i32, i32, i32
  }
  func.func @transform_13(%arg0: i32) -> (i32, i32, i32) {
    %c0_i32 = arith.constant 0 : i32
    %c0_i32_0 = arith.constant 0 : i32
    %c0_i32_1 = arith.constant 0 : i32
    return %arg0, %c0_i32, %c0_i32_0 : i32, i32, i32
  }
  func.func @transform_14(%arg0: i32) -> (i32, i32, i32) {
    %c0_i32 = arith.constant 0 : i32
    %c0_i32_0 = arith.constant 0 : i32
    %c0_i32_1 = arith.constant 0 : i32
    return %arg0, %c0_i32, %c0_i32_0 : i32, i32, i32
  }
  func.func @transform_15(%arg0: i32) -> (i32, i32, i32) {
    %c0_i32 = arith.constant 0 : i32
    %c0_i32_0 = arith.constant 0 : i32
    %c0_i32_1 = arith.constant 0 : i32
    return %arg0, %c0_i32, %c0_i32_0 : i32, i32, i32
  }
}

</mosaic_0001>

<bundles_post_ra>
// kernel: grid_attention_forward.3
= control target key start
LH: loop header
LB: loop body
LE: loop exit
PB: predicated region body
PF: predicated region fallthrough
CT: control target
= control target key end

     0   :  { %s298_s12 = smov 0   ;;  %s321_s0 = inlined_call_operand.vmem [shape: f32[2,8,256], index: 0, kind: input, shape index: {}, may-alias: {0,3}]   ;;  %s322_s1 = inlined_call_operand.vmem [shape: f32[8,1], index: 1, kind: input, shape index: {}]   ;;  %s323_s2 = inlined_call_operand.vmem [shape: f32[8,1], index: 2, kind: input, shape index: {}]   ;;  %s324_s3 = inlined_call_operand.vmem [shape: f32[2,8,256], index: 3, kind: output, shape index: {}, may-alias: {0,3}]  }
   0x1 LB: > { %s246_s13 = sadd.s32 4294967295, %s275_s12   ;;  %p250_p0 = scmp.ge.s32.totalorder %s275_s12, 1  ;;  %s275_s12 = sphi %s298_s12, %s13_s12  }
   0x2   : > { %p137_p1 = scmp.lt.s32.totalorder %s275_s12, 3 }
   0x4   : > { %p138_p2 = pnand %p250_p0, %p137_p1 }
   0x5   : > { %v173_v0 = vld [vmem:[%s322_s1] sm:$0xff] (!%p138_p2)  ;;  %v277_v1 = vmov (!%p138_p2), 0   ;;  %p161_p3 = scmp.lt.s32.totalorder (!%p138_p2), %s246_s13, 1 }
   0x6   : > { %141 = sbr.rel (%p138_p2) target bundleno = 142 (0x8e), region = 32  ;;  %268 = vset.pattern.permute.xlu0 (!%p138_p2), %v277_v1  ;;  %v181_v2 = vld [vmem:[%s323_s2] sm:$0xff] (!%p138_p2) }
   0x7   : > { %176 = vperm.xlu0 (!%p138_p2), %268, %v173_v0  }
   0xb   : > { %184 = vperm.xlu0 (!%p138_p2), %268, %v181_v2  }
   0xd   : > { %s326_s13 = smov (!%p161_p3, %s246_s13), 1 }
   0xe   : > { %s257_s18 = sshll.u32 %s326_s13, 4 }
   0xf   : > { %s165_s21 = scalar_lea.vmem %s321_s0, %s257_s18  ;;  %s170_s24 = scalar_lea.vmem %s324_s3, %s257_s18 }
  0x10   : > { %v171_v4 = vld [vmem:[%s165_s21] sm:$0xff]  ;;  %v172_v5 = vld [vmem:[%s165_s21 + $0x8] sm:$0xff] }
  0x86   : > { %v177_v3 = vpop.permute.xlu0 %176 }
  0x87   : > { %v179_v6 = vmul.f32 %v177_v3, %v171_v4  ;;  %v180_v7 = vmul.f32 %v177_v3, %v172_v5 }
  0x8a   : > { %v185_v8 = vpop.permute.xlu0 %184 }
  0x8b   : > { %v187_v9 = vadd.f32 %v185_v8, %v179_v6  ;;  %v188_v10 = vadd.f32 %v185_v8, %v180_v7 }
  0x8d   : > { %189 = vst [vmem:[%s170_s24] sm:$0xff] %v187_v9  ;;  %190 = vst [vmem:[%s170_s24 + $0x8] sm:$0xff] %v188_v10 }
  0x8e PF: > { %s13_s12 = sadd.s32 1, %s275_s12  }
  0x8f   : > { %p10_p4 = scmp.ge.s32.totalorder %s13_s12, 4  }
  0x91   :  { %12 = sbr.rel (!%p10_p4) target bundleno = 1 (0x1), region = 62 }

// kernel: grid_attention_forward.2
= control target key start
LH: loop header
LB: loop body
LE: loop exit
PB: predicated region body
PF: predicated region fallthrough
CT: control target
= control target key end

     0   :  { %s1440_s20 = smov 0   ;;  %s1560_s0 = inlined_call_operand.vmem [shape: f32[2,32,64], index: 0, kind: input, shape index: {}]   ;;  %s1561_s1 = inlined_call_operand.vmem [shape: f32[2,8,256], index: 1, kind: input, shape index: {}]   ;;  %s1562_s2 = inlined_call_operand.vmem [shape: f32[2,16,16], index: 2, kind: input, shape index: {}]   ;;  %s1563_s3 = inlined_call_operand.vmem [shape: f32[4,32], index: 3, kind: input, shape index: {}]   ;;  %s1564_s4 = inlined_call_operand.vmem [shape: f32[4,16], index: 4, kind: input, shape index: {}]   ;;  %s1565_s5 = inlined_call_operand.vmem [shape: f32[4,1], index: 5, kind: input, shape index: {}]   ;;  %s1566_s6 = inlined_call_operand.vmem [shape: f32[4,1], index: 6, kind: input, shape index: {}]   ;;  %s1567_s7 = inlined_call_operand.<no memory space> [shape: f32[1,1], index: 7, kind: input, shape index: {}]   ;;  %s1568_s8 = inlined_call_operand.vmem [shape: f32[16,64], index: 8, kind: input, shape index: {}]   ;;  %s1569_s9 = inlined_call_operand.vmem [shape: f32[64,256], index: 9, kind: input, shape index: {}]   ;;  %s1570_s10 = inlined_call_operand.vmem [shape: f32[8,8], index: 10, kind: input, shape index: {}]   ;;  %s1571_s11 = inlined_call_operand.vmem [shape: f32[8,1], index: 11, kind: input, shape index: {}]   ;;  %s1572_s12 = inlined_call_operand.vmem [shape: f32[2,8,256], index: 12, kind: output, shape index: {0}]   ;;  %s1573_s13 = inlined_call_operand.vmem [shape: f32[2,1,256], index: 13, kind: output, shape index: {1}]   ;;  %s1574_s14 = inlined_call_operand.vmem [shape: f32[2,8,1], index: 14, kind: output, shape index: {2}]   ;;  %s1575_s15 = inlined_call_operand.vmem [shape: f32[2,8,1], index: 15, kind: output, shape index: {3}]  }
   0x1   :  { %v21_v0 = vstv %s1567_s7 }
   0x2   :  { %22 = vst [vmem:[#allocation2] sm:$0x1] %v21_v0 }
   0x3 LB: > { %s1231_s21 = sadd.s32 4294967295, %s1350_s20   ;;  %p1235_p0 = scmp.ge.s32.totalorder %s1350_s20, 1  ;;  %s1350_s20 = sphi %s1440_s20, %s28_s20  }
   0x4   : > { %p466_p1 = scmp.lt.s32.totalorder %s1350_s20, 3 }
   0x6   : > { %p467_p2 = pnand %p1235_p0, %p466_p1 }
   0x7   : > { %p536_p3 = scmp.lt.s32.totalorder (!%p467_p2), %s1231_s21, 1  ;;  %v1352_v1 = vmov (!%p467_p2), 0.0|0.0   ;;  %vm1353_vm0 = vmmov (!%p467_p2), 0   ;;  %v1354_v2 = vmov (!%p467_p2), 0.0   ;;  %v576_v3 = vld [vmem:[%s1565_s5] sm:$0xf] (!%p467_p2)  ;;  %v827_v54 = vlaneseq (!%p467_p2) }
   0x8   : > { %470 = sbr.rel (%p467_p2) target bundleno = 1084 (0x43c), region = 68  ;;  %1295 = vmatprep.subr.bf16.mxu0 (!%p467_p2), %v1352_v1  ;;  %1274 = vmatprep.mubr.msk.f32.mxu0 (!%p467_p2), %vm1353_vm0, %v1354_v2  ;;  %v1355_v4 = vmov (!%p467_p2), 0   ;;  %v656_v5 = vld [vmem:[%s1568_s8] sm:$0xff] (!%p467_p2)  ;;  %v657_v6 = vld [vmem:[%s1568_s8 + $0x8] sm:$0xff] (!%p467_p2)  ;;  %vm582_vm1 = vcmask (!%p467_p2), 130048   ;;  %vm731_vm2 = vcmask (!%p467_p2), 261120  }
   0x9   : > { %1338 = vset.pattern.permute.xlu0 (!%p467_p2), %v1355_v4  ;;  %1298 = vmatprep.subr.bf16.mxu1 (!%p467_p2), %v1352_v1  ;;  %v1299_v7 = vpack.c.bf16 (!%p467_p2), %v657_v6, %v656_v5  ;;  %v806_v8 = vld [vmem:[%s1566_s6] sm:$0xf] (!%p467_p2)  ;;  %v839_v26 = vld [vmem:[%s1569_s9 + $0x8] sm:$0xff] (!%p467_p2)  ;;  %v841_v27 = vld [vmem:[%s1569_s9 + $0x18] sm:$0xff] (!%p467_p2)  ;;  %vm813_vm3 = vcmask (!%p467_p2), 519168   ;;  %v828_v58 = vshrl.u32 (!%p467_p2), %v827_v54, 7 }
   0xa   : > { %579 = vperm.xlu0 (!%p467_p2), %1338, %v576_v3   ;;  %1281 = vmatprep.mubr.msk.f32.mxu1 (!%p467_p2), %vm1353_vm0, %v1354_v2  ;;  %v573_v12 = vld [vmem:[%s1564_s4] sm:$0xf] (!%p467_p2)  ;;  %v1307_v28 = vpack.c.bf16 (!%p467_p2), %v841_v27, %v839_v26  ;;  %v840_v30 = vld [vmem:[%s1569_s9 + $0x10] sm:$0xff] (!%p467_p2)  ;;  %v843_v32 = vld [vmem:[%s1569_s9 + $0x28] sm:$0xff] (!%p467_p2)  ;;  %vm854_vm4 = vcmask (!%p467_p2), 523264   ;;  %vm949_vm5 = vcmp.lt.s32.totalorder (!%p467_p2), %v827_v54, 256 }
   0xb   : > { %1339 = vset.pattern.permute.xlu1 (!%p467_p2), %v1355_v4  ;;  %1300 = vmatpush3.bf16.msra.mxu1 (!%p467_p2), %v1299_v7  ;;  %v821_v13 = vld [vmem:[#allocation2] sm:$0x1] (!%p467_p2)  ;;  %v845_v33 = vld [vmem:[%s1569_s9 + $0x38] sm:$0xff] (!%p467_p2)  ;;  %v844_v36 = vld [vmem:[%s1569_s9 + $0x30] sm:$0xff] (!%p467_p2)  ;;  %v829_v61 = vsub.s32 (!%p467_p2), 0, %v828_v58  ;;  %vm971_vm6 = vcmask (!%p467_p2), 64512  }
   0xc   : > { %1301 = vmatprep.subr.bf16.mxu1 (!%p467_p2), %v1352_v1  ;;  %824 = vperm.xlu1 (!%p467_p2), %1339, %v821_v13   ;;  %v965_v14 = vld [vmem:[%s1571_s11] sm:$0xff] (!%p467_p2)  ;;  %v1311_v34 = vpack.c.bf16 (!%p467_p2), %v845_v33, %v843_v32  ;;  %v847_v38 = vld [vmem:[%s1569_s9 + $0x48] sm:$0xff] (!%p467_p2)  ;;  %v849_v39 = vld [vmem:[%s1569_s9 + $0x58] sm:$0xff] (!%p467_p2)  ;;  %vm1051_vm7 = vcmask (!%p467_p2), 7168  }
   0xd   : > { %v568_v25 = vld [vmem:[%s1563_s3] sm:$0xf] (!%p467_p2)  ;;  %v1315_v41 = vpack.c.bf16 (!%p467_p2), %v849_v39, %v847_v38  ;;  %v848_v42 = vld [vmem:[%s1569_s9 + $0x50] sm:$0xff] (!%p467_p2)  ;;  %v851_v43 = vld [vmem:[%s1569_s9 + $0x68] sm:$0xff] (!%p467_p2) }
   0xe   : > { %809 = vperm.xlu0 (!%p467_p2), %1338, %v806_v8   ;;  %v838_v29 = vld [vmem:[%s1569_s9] sm:$0xff] (!%p467_p2)  ;;  %v853_v44 = vld [vmem:[%s1569_s9 + $0x78] sm:$0xff] (!%p467_p2)  ;;  %v852_v48 = vld [vmem:[%s1569_s9 + $0x70] sm:$0xff] (!%p467_p2)  ;;  %v1356_v8 = vmov (!%p467_p2), 1966171168  }
   0xf   : > { %s1577_s21 = smov (!%p536_p3, %s1231_s21), 1  ;;  %v1309_v31 = vpack.c.bf16 %v840_v30, %v838_v29  ;;  %v842_v35 = vld [vmem:[%s1569_s9 + $0x20] sm:$0xff]  ;;  %v1319_v46 = vpack.c.bf16 %v853_v44, %v851_v43 }
  0x10   : > { %s1462_s27 = sshll.u32 %s1577_s21, 4  ;;  %968 = vperm.xlu1 %1339, %v965_v14   ;;  %s1255_s23 = sshll.u32 %s1577_s21, 5  ;;  %v1313_v37 = vpack.c.bf16 %v844_v36, %v842_v35  ;;  %v846_v40 = vld [vmem:[%s1569_s9 + $0x40] sm:$0xff] }
  0x11   : > { %s550_s17 = scalar_lea.vmem %s1562_s2, %s1462_s27  ;;  %s540_s26 = scalar_lea.vmem %s1560_s0, %s1255_s23  ;;  %v1317_v45 = vpack.c.bf16 %v848_v42, %v846_v40  ;;  %v850_v47 = vld [vmem:[%s1569_s9 + $0x60] sm:$0xff] }
  0x12   : > { %v574_v9 = vld [vmem:[%s550_s17] sm:$0xff]  ;;  %v575_v10 = vld [vmem:[%s550_s17 + $0x8] sm:$0xff]  ;;  %v571_v22 = vld [vmem:[%s540_s26 + $0x10] sm:$0xff]  ;;  %v1321_v49 = vpack.c.bf16 %v852_v48, %v850_v47  ;;  %s545_s24 = scalar_lea.vmem %s1561_s1, %s1462_s27  ;;  %s1244_s25 = sshll.u32 %s1577_s21, 1 }
  0x13   : > { %v1296_v11 = vpack.c.bf16 %v575_v10, %v574_v9  ;;  %v569_v15 = vld [vmem:[%s540_s26] sm:$0xff]  ;;  %v570_v16 = vld [vmem:[%s540_s26 + $0x8] sm:$0xff]  ;;  %v572_v23 = vld [vmem:[%s540_s26 + $0x18] sm:$0xff]  ;;  %v933_v9 = vunpack.c.l.s4 %v1356_v8  ;;  %s559_s29 = scalar_lea.vmem %s1573_s13, %s1244_s25  ;;  %s555_s19 = scalar_lea.vmem %s1572_s12, %s1462_s27 }
  0x14   : > { %v1302_v19 = vpack.c.bf16 %v570_v16, %v569_v15  ;;  %v1305_v24 = vpack.c.bf16 %v572_v23, %v571_v22  ;;  %v953_v15 = vld [vmem:[%s545_s24 + $0x8] sm:$0xff]  ;;  %v952_v16 = vld [vmem:[%s545_s24] sm:$0xff]  ;;  %s1245_s7 = sshll.u32 %s1577_s21, 3 }
  0x15   : > { %1297 = vmatpush3.bf16.msra.mxu0 %v1296_v11  ;;  %v934_v10 = vunpack.c.0.s8 %v933_v9  ;;  %v964_v22 = vld [vmem:[%s1570_s10] sm:$0xff]  ;;  %s563_s24 = scalar_lea.vmem %s1574_s14, %s1245_s7  ;;  %s567_s26 = scalar_lea.vmem %s1575_s15, %s1245_s7 }
  0x16   : > { %1308 = vmatprep.subr.bf16.mxu0 %v1307_v28 }
  0x18   : > { %1275 = vmatmul.mubr.msk.f32.vlgmr.msra.gmra.mrb[0].mxu0 %vm582_vm1, %v573_v12  ;;  %v937_v12 = vsub.s32 %v934_v10, %v828_v58 }
  0x19   : > { %922 = vmatprep.mubr.f32.mxu0 %v1354_v2  ;;  %1310 = vmatpush1.bf16.msra.mxu0 %v1309_v31 }
  0x1a   : > { %1312 = vmatprep.subr.bf16.mxu0 %v1311_v34 }
  0x1d   : > { %1314 = vmatpush1.bf16.msra.mxu0 %v1313_v37 }
  0x1e   : > { %1316 = vmatprep.subr.bf16.mxu0 %v1315_v41 }
  0x21   : > { %1318 = vmatpush1.bf16.msra.mxu0 %v1317_v45 }
  0x22   : > { %1320 = vmatprep.subr.bf16.mxu0 %v1319_v46 }
  0x25   : > { %1322 = vmatpush1.bf16.msra.mxu0 %v1321_v49 }
  0x89   : > { %v580_v17 = vpop.permute.xlu0 %579 }
  0x8b   : > { %v825_v63 = vpop.permute.xlu1 %824 }
  0x8d   : > { %v810_v53 = vpop.permute.xlu0 %809 }
  0xeb   : > { %v652_v18 = vpop.f32.mrb[0].mxu0 }
  0xec   : > { %v653_v20 = vadd.f32 %v652_v18, %v580_v17  ;;  %v1276_v21 = vpop.f32.mrb[1].mxu0 }
  0xee   : > { %1282 = vmatmul.mubr.msk.f32.vlgmr.msra.gmra.mrb[0].mxu1 %vm582_vm1, %v653_v20 }
  0xef   : > { %1303 = vmatpush3.bf16.msra.mxu1 %v1302_v19  ;;  %1292 = vmatprep.mubr.msk.f32.mxu1 %vm1353_vm0, %v1354_v2 }
  0xf0   : > { %1304 = vmatprep.subr.bf16.mxu1 %v1352_v1  ;;  %v830_v1 = vrot.slane %v825_v63, %v829_v61 }
  0xf3   : > { %1306 = vmatpush3.bf16.msra.mxu1 %v1305_v24  ;;  %v969_v24 = vpop.permute.xlu1 %968 }
  0xf6   : > { %1293 = vmatmul.mubr.msk.f32.vlgmr.msra.gmra.mrb[0].mxu1 %vm731_vm2, %v568_v25 }
  0xf7   : > { %1039 = vmatprep.mubr.f32.mxu1 %v1354_v2 }
 0x1c9   : > { %v801_v50 = vpop.f32.mrb[0].mxu1 }
 0x1ca   : > { %v805_v51 = vmax.f32 %v801_v50, 0.0  ;;  %v1294_v52 = vpop.f32.mrb[1].mxu1 }
 0x1cc   : > { %v812_v55 = vmul.f32 %v810_v53, %v805_v51 }
 0x1ce   : > { %v814_v56 = vsel %vm813_vm3, %v812_v55, 0.0 }
 0x1cf   : > { %v815_v57 = vrot.slane %v814_v56, 4 }
 0x1d1   : > { %v816_v59 = vadd.f32 %v815_v57, %v814_v56 }
 0x1d3   : > { %v817_v60 = vrot.slane %v816_v59, 2 }
 0x1d5   : > { %v818_v62 = vadd.f32 %v817_v60, %v816_v59 }
 0x1d7   : > { %v819_v0 = vrot.slane %v818_v62, 1 }
 0x1d9   : > { %v820_v2 = vadd.f32 %v819_v0, %v818_v62 }
 0x1db   : > { %v831_v3 = vadd.f32 %v830_v1, %v820_v2 }
 0x1dd   : > { %v1250_v4 = vmul.f32 -1.442695, %v831_v3 }
 0x1df   : > { %1340 = vpow2.f32 %v1250_v4 }
 0x1e9   : > { %v1341_v5 = vpop.eup %1340 }
 0x1ea   : > { %v835_v6 = vadd.f32 1.0, %v1341_v5 }
 0x1ec   : > { %1342 = vrcp.f32 %v835_v6 }
 0x1f6   : > { %v1343_v7 = vpop.eup %1342 }
 0x1f7   : > { %1251 = vmatmul.mubr.msk.f32.vlgmr.msra.gmra.mrb[2].mxu0 %vm854_vm4, %v1343_v7 }
 0x2ca   : > { %v924_v11 = vpop.f32.mrb[2].mxu0 }
 0x2cb   : > { %v957_v13 = vrot.slane %v924_v11, %v829_v61  ;;  %v926_v14 = vpop.f32.mrb[3].mxu0 }
 0x2cc   : > { %v931_v17 = vcombine.low %v924_v11, %v926_v14  ;;  %v961_v18 = vrot.slane %v926_v14, %v829_v61 }
 0x2cd   : > { %v962_v21 = vmul.f32 %v957_v13, %v952_v16 }
 0x2ce   : > { %v938_v19 = vrot.slane %v931_v17, %v937_v12  ;;  %v963_v20 = vmul.f32 %v961_v18, %v953_v15 }
 0x2d0   : > { %v945_v23 = vrot.slane %v938_v19, %v937_v12  ;;  %975 = vmatprep.subr.mxu1 %v963_v20 }
 0x2d1   : > { %976 = vmatpush1.msra.mxu1 %v962_v21 }
 0x2d2   : > { %951 = vst.msk [vmem:[%s559_s29] sm:$0x3] %vm949_vm5, %v945_v23  ;;  %1252 = vmatmul.mubr.msk.f32.vlgmr.msra.gmra.mrb[2].mxu1 %vm971_vm6, %v964_v22 }
 0x3a5   : > { %v1041_v25 = vpop.f32.mrb[2].mxu1 }
 0x3a6   : > { %v1042_v26 = vadd.f32 %v1041_v25, %v969_v24  ;;  %v1043_v27 = vpop.f32.mrb[3].mxu1 }
 0x3a7   : > { %v1044_v28 = vadd.f32 %v1043_v27, %v969_v24 }
 0x3a8   : > { %1046 = vst [vmem:[%s555_s19] sm:$0xff] %v1042_v26  ;;  %v1053_v29 = vmul.f32 %v1042_v26, %v1042_v26 }
 0x3a9   : > { %1047 = vst [vmem:[%s555_s19 + $0x8] sm:$0xff] %v1044_v28  ;;  %v1048_v30 = vadd.f32 %v1044_v28, %v1042_v26  ;;  %v1054_v31 = vmul.f32 %v1044_v28, %v1044_v28 }
 0x3ab   : > { %1049 = vadd.xlane.f32.xlu0 %v1048_v30  ;;  %v1055_v32 = vadd.f32 %v1054_v31, %v1053_v29 }
 0x3ad   : > { %1056 = vadd.xlane.f32.xlu1 %v1055_v32 }
 0x438   : > { %v1050_v33 = vpop.xlane.xlu0 %1049 }
 0x439   : > { %1052 = vst.msk [vmem:[%s563_s24] sm:$0xff] %vm1051_vm7, %v1050_v33 }
 0x43a   : > { %v1057_v34 = vpop.xlane.xlu1 %1056 }
 0x43b   : > { %1058 = vst.msk [vmem:[%s567_s26] sm:$0xff] %vm1051_vm7, %v1057_v34 }
 0x43c PF: > { %s28_s20 = sadd.s32 1, %s1350_s20  }
 0x43d   : > { %p25_p4 = scmp.ge.s32.totalorder %s28_s20, 4  }
 0x43f   :  { %27 = sbr.rel (!%p25_p4) target bundleno = 3 (0x3), region = 140 }

</bundles_post_ra>
